<compile_context>
chip_gen: v7x
topology: tpu7x:2x2x1
jax: 0.10.0
libtpu: 0.0.40
codegen_flags: <defaults>
</compile_context>

<pallas_src>
import math

import jax
import jax.numpy as jnp
from jax.experimental import pallas as pl
from jax.experimental.pallas import tpu as pltpu

_LOG_2PI = math.log(2.0 * math.pi)  # trace-time Python constant (hoisted)


# ------------------------- static tiling helpers ----------------------------

def _pick_row_tile(rows, lanes, bytes_per_el=2, tile_budget=1 << 20, max_rows=512):
    """Largest multiple-of-8 row tile dividing `rows`, capped at 512 rows and
    ~1 MiB per streamed input so 3-4 inputs x double buffering stays well
    inside the scoped-VMEM defaults on all generations (16 MiB v5e, 32 MiB
    v6e/v7x, 64 MiB physical on v7x).  >=512-row tiles already reach ~85% of
    the HBM roofline; bigger buys ~1% and risks v7x VMEM."""
    cap = min(max_rows, max(8, (tile_budget // (lanes * bytes_per_el)) // 8 * 8))
    if rows <= cap:
        return rows, 1
    for cand in range(cap, 7, -8):
        if rows % cand == 0:
            return cand, rows // cand
    # TODO(synk): pad/mask ragged row counts instead of whole-slab fallback.
    return rows, 1


def _core_split(n_tiles, max_cores=2):
    """Split the row-tile axis across (up to) the two v7x TensorCores, but only
    when each core gets >=2 tiles; degenerates to 1 at toy sizes and is a no-op
    on single-TC v5e/v6e."""
    if n_tiles % max_cores == 0 and n_tiles >= 2 * max_cores:
        return max_cores, n_tiles // max_cores
    return 1, n_tiles


def _accum_rows(term):
    """(R, D) per-element terms -> (8, D) partial sums using only VPU adds over
    native sublane groups (no cross-lane XLU reduce on the per-tile hot path)."""
    r, d = term.shape
    return jnp.sum(term.reshape(r // 8, 8, d), axis=0)


# ----------------------------- Pallas kernels -------------------------------

def _sample_kernel(mu_ref, ls_ref, eps_ref, out_ref):
    # Elementwise: out = mu + exp(log_sigma) * eps  (bf16 in, f32 math, bf16 out)
    mu = mu_ref[...].astype(jnp.float32)
    ls = ls_ref[...].astype(jnp.float32)
    eps = eps_ref[...].astype(jnp.float32)
    out_ref[...] = (mu + jnp.exp(ls) * eps).astype(out_ref.dtype)


def _fused_sample_lp_kl_kernel(mu_ref, ls_ref, eps_ref, out_ref, lp_ref, kl_ref):
    # One HBM pass over the params -> samples + log q(sample) + KL partials.
    @pl.when(pl.program_id(1) == 0)
    def _():
        lp_ref[...] = jnp.zeros_like(lp_ref)
        kl_ref[...] = jnp.zeros_like(kl_ref)

    mu = mu_ref[...].astype(jnp.float32)
    ls = ls_ref[...].astype(jnp.float32)
    eps = eps_ref[...].astype(jnp.float32)

    sigma = jnp.exp(ls)                                # one EUP pass, reused 3x
    out_ref[...] = (mu + sigma * eps).astype(out_ref.dtype)
    # log q(z) at z = mu + sigma*eps: standardized residual is exactly eps.
    lp_ref[...] += _accum_rows(-0.5 * (eps * eps) - ls)
    kl_ref[...] += _accum_rows(0.5 * (mu * mu + sigma * sigma) - ls)


def _logprob_kl_kernel(z_ref, mu_ref, ls_ref, lp_ref, kl_ref):
    # Fused combined log_prob(z) + combined KL; mu/log_sigma streamed once.
    @pl.when(pl.program_id(1) == 0)
    def _():
        lp_ref[...] = jnp.zeros_like(lp_ref)
        kl_ref[...] = jnp.zeros_like(kl_ref)

    z = z_ref[...].astype(jnp.float32)
    mu = mu_ref[...].astype(jnp.float32)
    ls = ls_ref[...].astype(jnp.float32)

    sigma = jnp.exp(ls)                                # single exp per element
    inv_sigma = pl.reciprocal(sigma, approx=True)      # EUP vrcp (cheap slot)
    resid = (z - mu) * inv_sigma
    lp_ref[...] += _accum_rows(-0.5 * (resid * resid) - ls)
    kl_ref[...] += _accum_rows(0.5 * (mu * mu + sigma * sigma) - ls)


def _kl_kernel(mu_ref, ls_ref, kl_ref):
    # KL-only reduction (compute_kl_divergence never needs z).
    @pl.when(pl.program_id(1) == 0)
    def _():
        kl_ref[...] = jnp.zeros_like(kl_ref)

    mu = mu_ref[...].astype(jnp.float32)
    ls = ls_ref[...].astype(jnp.float32)
    sigma = jnp.exp(ls)
    kl_ref[...] += _accum_rows(0.5 * (mu * mu + sigma * sigma) - ls)


# --------------------------- jitted entry points -----------------------------

def _sample_pallas(mu, log_sigma, eps):
    g, n, d = mu.shape
    r = g * n
    mu2, ls2, eps2 = (a.reshape(r, d) for a in (mu, log_sigma, eps))
    tile_r, n_tiles = _pick_row_tile(r, d)
    spec = pl.BlockSpec((tile_r, d), lambda ti: (ti, 0))
    samples = pl.pallas_call(
        _sample_kernel,
        out_shape=jax.ShapeDtypeStruct((r, d), mu.dtype),
        grid=(n_tiles,),
        in_specs=[spec, spec, spec],
        out_specs=spec,
        compiler_params=pltpu.CompilerParams(
            dimension_semantics=(("parallel",) if n_tiles > 1 else ("arbitrary",))),
    )(mu2, ls2, eps2)
    return samples.reshape(g, n, d)


@jax.jit
def batched_sample(mu, log_sigma, eps):
    """(G,N,D) params -> (G,N,D) samples, single pallas_call."""
    return _sample_pallas(mu, log_sigma, eps)


@jax.jit
def batched_sample_split(mu, log_sigma, eps):
    """Same, but split into per-generator arrays INSIDE the jit (one dispatch)."""
    s = _sample_pallas(mu, log_sigma, eps)
    return tuple(s[i] for i in range(s.shape[0]))


@jax.jit
def batched_sample_logprob_kl(mu, log_sigma, eps):
    """Fully fused training step: one param pass -> samples, log q(sample), KL."""
    g, n, d = mu.shape
    r = g * n
    mu2, ls2, eps2 = (a.reshape(r, d) for a in (mu, log_sigma, eps))
    tile_r, n_tiles = _pick_row_tile(r, d)
    c, tpc = _core_split(n_tiles)
    row_spec = pl.BlockSpec((tile_r, d), lambda ci, ti: (ci * tpc + ti, 0))
    part_spec = pl.BlockSpec((None, 8, d), lambda ci, ti: (ci, 0, 0))  # resident
    samples, lp_part, kl_part = pl.pallas_call(
        _fused_sample_lp_kl_kernel,
        out_shape=(jax.ShapeDtypeStruct((r, d), mu.dtype),
                   jax.ShapeDtypeStruct((c, 8, d), jnp.float32),
                   jax.ShapeDtypeStruct((c, 8, d), jnp.float32)),
        grid=(c, tpc),
        in_specs=[row_spec, row_spec, row_spec],
        out_specs=(row_spec, part_spec, part_spec),
        compiler_params=pltpu.CompilerParams(
            dimension_semantics=("parallel" if c > 1 else "arbitrary", "arbitrary")),
    )(mu2, ls2, eps2)
    numel = g * n * d
    lp = jnp.sum(lp_part) - 0.5 * _LOG_2PI * numel   # hoisted constants
    kl = jnp.sum(kl_part) - 0.5 * numel
    return samples.reshape(g, n, d), lp, kl


@jax.jit
def batched_logprob_kl(z, mu, log_sigma):
    """Combined log_prob(z) and combined KL, one pallas_call, two scalars."""
    g, n, d = mu.shape
    tile_n, t_n = _pick_row_tile(n, d)
    z_spec = pl.BlockSpec((tile_n, d), lambda gi, ti: (ti, 0))
    p_spec = pl.BlockSpec((None, tile_n, d), lambda gi, ti: (gi, ti, 0))
    part_spec = pl.BlockSpec((None, 8, d), lambda gi, ti: (gi, 0, 0))  # resident
    lp_part, kl_part = pl.pallas_call(
        _logprob_kl_kernel,
        out_shape=(jax.ShapeDtypeStruct((g, 8, d), jnp.float32),
                   jax.ShapeDtypeStruct((g, 8, d), jnp.float32)),
        grid=(g, t_n),
        in_specs=[z_spec, p_spec, p_spec],
        out_specs=(part_spec, part_spec),
        compiler_params=pltpu.CompilerParams(
            dimension_semantics=("parallel" if g > 1 else "arbitrary", "arbitrary")),
    )(z, mu, log_sigma)
    numel = g * n * d
    lp = jnp.sum(lp_part) - 0.5 * _LOG_2PI * numel
    kl = jnp.sum(kl_part) - 0.5 * numel
    return lp, kl


@jax.jit
def batched_kl(mu, log_sigma):
    """Combined KL divergence only, one pallas_call, one scalar."""
    g, n, d = mu.shape
    r = g * n
    mu2, ls2 = mu.reshape(r, d), log_sigma.reshape(r, d)
    tile_r, n_tiles = _pick_row_tile(r, d)
    c, tpc = _core_split(n_tiles)
    row_spec = pl.BlockSpec((tile_r, d), lambda ci, ti: (ci * tpc + ti, 0))
    part_spec = pl.BlockSpec((None, 8, d), lambda ci, ti: (ci, 0, 0))  # resident
    kl_part = pl.pallas_call(
        _kl_kernel,
        out_shape=jax.ShapeDtypeStruct((c, 8, d), jnp.float32),
        grid=(c, tpc),
        in_specs=[row_spec, row_spec],
        out_specs=part_spec,
        compiler_params=pltpu.CompilerParams(
            dimension_semantics=("parallel" if c > 1 else "arbitrary", "arbitrary")),
    )(mu2, ls2)
    return jnp.sum(kl_part) - 0.5 * (g * n * d)


# ------------------------------ glue classes --------------------------------

class GaussianGenerator:
    """Mean-field Gaussian generator; forward() takes no args (like PyTorch)."""

    def __init__(self, key, n, d):
        # TODO(synk): pad/mask ragged shapes; kernels assume TPU tile alignment.
        assert n % 8 == 0 and d % 128 == 0, "expect sublane/lane aligned shapes"
        k_mu, k_ls, k_eps = jax.random.split(key, 3)
        # bf16 storage halves the HBM bytes every (mem-bound) kernel streams;
        # kernels upcast to f32 immediately after load and accumulate in f32.
        self.mu = (0.1 * jax.random.normal(k_mu, (n, d))).astype(jnp.bfloat16)
        self.log_sigma = (-1.0 + 0.05 * jax.random.normal(k_ls, (n, d))
                          ).astype(jnp.bfloat16)
        # Deterministic noise baked in so forward() is parameter-only,
        # mirroring the nn.Module call signature (synthetic; no checkpoint).
        self.eps = jax.random.normal(k_eps, (n, d)).astype(jnp.bfloat16)
        # Pre-expanded (1,N,D) views so per-generator calls don't re-dispatch
        # an expand_dims op on every invocation.
        self._mu3 = self.mu[None]
        self._ls3 = self.log_sigma[None]
        self._eps3 = self.eps[None]

    def __call__(self):
        return batched_sample_split(self._mu3, self._ls3, self._eps3)[0]

    def log_prob(self, z):
        lp, _ = batched_logprob_kl(z, self._mu3, self._ls3)
        return lp

    def compute_kl_divergence(self):
        return batched_kl(self._mu3, self._ls3)


class CombinedGenerator:
    """JAX/Pallas port of pinn_lightning CombinedGenerator.

    Homogeneous GaussianGenerator sub-generators are stacked once into (G,N,D)
    slabs so every public op is a single batched pallas_call; otherwise it
    falls back to the generic per-generator loop (same semantics as PyTorch).
    """

    def __init__(self, generators):
        self.generators = list(generators)
        self._batched = (
            len(self.generators) > 0
            and all(isinstance(g, GaussianGenerator) for g in self.generators)
            and len({g.mu.shape for g in self.generators}) == 1
        )
        if self._batched:
            self._mu = jnp.stack([g.mu for g in self.generators])
            self._log_sigma = jnp.stack([g.log_sigma for g in self.generators])
            self._eps = jnp.stack([g.eps for g in self.generators])

    # -- forward ----------------------------------------------------------
    def forward(self):
        if self._batched:
            # Per-generator split happens INSIDE the jit: one dispatch returns
            # G arrays (no host-side slicing of the stacked result).
            return list(batched_sample_split(self._mu, self._log_sigma, self._eps))
        return [generator() for generator in self.generators]

    def __call__(self):
        return self.forward()

    def forward_stacked(self):
        """Optional: the stacked (G,N,D) samples in one array / one dispatch."""
        if self._batched:
            return batched_sample(self._mu, self._log_sigma, self._eps)
        return jnp.stack(self.forward())

    # -- log_prob ----------------------------------------------------------
    def log_prob(self, *args, **kwargs):
        if self._batched and len(args) == 1 and not kwargs:
            lp, _ = batched_logprob_kl(args[0], self._mu, self._log_sigma)
            return lp
        res = 0.0
        for generator in self.generators:
            res += generator.log_prob(*args, **kwargs)
        return res

    def log_prob_and_kl(self, z):
        """Both terms for an external z from one HBM pass over the params."""
        if self._batched:
            return batched_logprob_kl(z, self._mu, self._log_sigma)
        return self.log_prob(z), self.compute_kl_divergence()

    def sample_log_prob_kl(self):
        """Fused training step: samples, log q(sample), KL from ONE kernel."""
        if self._batched:
            return batched_sample_logprob_kl(self._mu, self._log_sigma, self._eps)
        # TODO(synk): generic (non-Gaussian) fused fallback.
        samples = jnp.stack(self.forward())
        lp = 0.0
        for i, generator in enumerate(self.generators):
            lp += generator.log_prob(samples[i])
        return samples, lp, self.compute_kl_divergence()

    # -- KL ----------------------------------------------------------------
    def kl_divergence(self, *args, **kwargs):
        raise NotImplementedError

    def compute_kl_divergence(self):
        if self._batched:
            return batched_kl(self._mu, self._log_sigma)
        res = 0.0
        for generator in self.generators:
            res += generator.compute_kl_divergence()
        return res


# --------------------------------- main --------------------------------------

if __name__ == "__main__":
    key = jax.random.PRNGKey(0)
    N, D = 8, 128  # small, TPU-tile-aligned (sublane=8, lane=128)

    k1, k2, k3, kz = jax.random.split(key, 4)
    gens = [GaussianGenerator(k1, N, D),
            GaussianGenerator(k2, N, D),
            GaussianGenerator(k3, N, D)]
    combined = CombinedGenerator(gens)

    # forward(): list of samples, one per sub-generator (single batched kernel)
    outputs = combined()
    outputs = [jax.block_until_ready(o) for o in outputs]
    assert len(outputs) == 3
    for o in outputs:
        assert o.shape == (N, D)

    # log_prob(z): summed scalar across sub-generators (fused lp+kl kernel)
    z = jax.random.normal(kz, (N, D), dtype=jnp.float32)
    lp = jax.block_until_ready(combined.log_prob(z))
    kl = jax.block_until_ready(combined.compute_kl_divergence())
    assert lp.shape == () and kl.shape == ()

    # external-z fused path (both terms from one HBM pass)
    lp2, kl2 = combined.log_prob_and_kl(z)
    lp2, kl2 = jax.block_until_ready((lp2, kl2))

    # fully fused training-step path: samples + log q(sample) + KL, one kernel
    samples_fused, lp_s, kl_s = combined.sample_log_prob_kl()
    jax.block_until_ready((samples_fused, lp_s, kl_s))

    # ---- correctness cross-check against a pure-jnp reference ----
    lp_ref, kl_ref, lp_s_ref = 0.0, 0.0, 0.0
    for i, g in enumerate(gens):
        mu = g.mu.astype(jnp.float32)
        ls = g.log_sigma.astype(jnp.float32)
        eps = g.eps.astype(jnp.float32)
        sig = jnp.exp(ls)
        lp_ref += jnp.sum(-0.5 * ((z - mu) / sig) ** 2 - ls - 0.5 * _LOG_2PI)
        kl_ref += jnp.sum(0.5 * (mu ** 2 + sig ** 2 - 1.0) - ls)
        lp_s_ref += jnp.sum(-0.5 * eps ** 2 - ls - 0.5 * _LOG_2PI)
        samp_ref = mu + sig * eps
        assert jnp.allclose(outputs[i].astype(jnp.float32), samp_ref,
                            rtol=2e-2, atol=2e-2)            # bf16 sample output
        assert jnp.allclose(samples_fused[i].astype(jnp.float32), samp_ref,
                            rtol=2e-2, atol=2e-2)

    assert jnp.allclose(lp, lp_ref, rtol=1e-2, atol=1.0)      # approx 1/sigma
    assert jnp.allclose(kl, kl_ref, rtol=2e-3, atol=1e-1)
    assert jnp.allclose(lp2, lp, rtol=1e-6, atol=1e-3)
    assert jnp.allclose(kl2, kl, rtol=1e-6, atol=1e-3)
    assert jnp.allclose(lp_s, lp_s_ref, rtol=1e-3, atol=1e-1)
    assert jnp.allclose(kl_s, kl_ref, rtol=2e-3, atol=1e-1)

    print("KERNEL_OK")
</pallas_src>

<mosaic_0001>
module attributes {stable_mosaic.version = 11 : i64} {
  func.func @_sample_kernel(%arg0: i32, %arg1: memref<24x128xbf16, #tpu.memory_space<vmem>>, %arg2: memref<24x128xbf16, #tpu.memory_space<vmem>>, %arg3: memref<24x128xbf16, #tpu.memory_space<vmem>>, %arg4: memref<24x128xbf16, #tpu.memory_space<vmem>>) attributes {dimension_semantics = [#tpu.dimension_semantics<arbitrary>], iteration_bounds = array<i64: 1>, scalar_prefetch = 0 : i64, scratch_operands = 0 : i64, tpu.core_type = #tpu.core_type<tc>, window_params = [{transform_indices = @transform_0, window_bounds = array<i64: 24, 128>}, {transform_indices = @transform_1, window_bounds = array<i64: 24, 128>}, {transform_indices = @transform_2, window_bounds = array<i64: 24, 128>}, {transform_indices = @transform_3, window_bounds = array<i64: 24, 128>}]} {
    %c0 = arith.constant 0 : index
    %c0_0 = arith.constant 0 : index
    %0 = vector.load %arg1[%c0, %c0_0] : memref<24x128xbf16, #tpu.memory_space<vmem>>, vector<24x128xbf16>
    %1 = arith.extf %0 : vector<24x128xbf16> to vector<24x128xf32>
    %c0_1 = arith.constant 0 : index
    %c0_2 = arith.constant 0 : index
    %2 = vector.load %arg2[%c0_1, %c0_2] : memref<24x128xbf16, #tpu.memory_space<vmem>>, vector<24x128xbf16>
    %3 = arith.extf %2 : vector<24x128xbf16> to vector<24x128xf32>
    %c0_3 = arith.constant 0 : index
    %c0_4 = arith.constant 0 : index
    %4 = vector.load %arg3[%c0_3, %c0_4] : memref<24x128xbf16, #tpu.memory_space<vmem>>, vector<24x128xbf16>
    %5 = arith.extf %4 : vector<24x128xbf16> to vector<24x128xf32>
    %6 = math.exp %3 : vector<24x128xf32>
    %7 = arith.mulf %6, %5 : vector<24x128xf32>
    %8 = arith.addf %1, %7 : vector<24x128xf32>
    %9 = arith.truncf %8 : vector<24x128xf32> to vector<24x128xbf16>
    %c0_5 = arith.constant 0 : index
    %c0_6 = arith.constant 0 : index
    %10 = vector.load %arg4[%c0_5, %c0_6] : memref<24x128xbf16, #tpu.memory_space<vmem>>, vector<24x128xbf16>
    tpu.vector_store %arg4[%c0_5, %c0_6], %9 {strides = array<i32>} : memref<24x128xbf16, #tpu.memory_space<vmem>>, vector<24x128xbf16>,
    return
  }
  func.func @transform_0(%arg0: i32) -> (i32, i32) {
    %c0_i32 = arith.constant 0 : i32
    %c0_i32_0 = arith.constant 0 : i32
    return %arg0, %c0_i32 : i32, i32
  }
  func.func @transform_1(%arg0: i32) -> (i32, i32) {
    %c0_i32 = arith.constant 0 : i32
    %c0_i32_0 = arith.constant 0 : i32
    return %arg0, %c0_i32 : i32, i32
  }
  func.func @transform_2(%arg0: i32) -> (i32, i32) {
    %c0_i32 = arith.constant 0 : i32
    %c0_i32_0 = arith.constant 0 : i32
    return %arg0, %c0_i32 : i32, i32
  }
  func.func @transform_3(%arg0: i32) -> (i32, i32) {
    %c0_i32 = arith.constant 0 : i32
    %c0_i32_0 = arith.constant 0 : i32
    return %arg0, %c0_i32 : i32, i32
  }
}

</mosaic_0001>

<bundles_post_ra>
// kernel: batched_sample_split.1
= control target key start
LH: loop header
LB: loop body
LE: loop exit
PB: predicated region body
PF: predicated region fallthrough
CT: control target
= control target key end

     0   :  { %8 = vsyncpa [#allocation3], 0  ;;  %s235_s0 = inlined_call_operand.vmem [shape: bf16[24,128], index: 0, kind: input, shape index: {}]   ;;  %s236_s1 = inlined_call_operand.hbm [shape: bf16[24,128], index: 1, kind: input, shape index: {}]   ;;  %s237_s2 = inlined_call_operand.hbm [shape: bf16[24,128], index: 2, kind: input, shape index: {}]   ;;  %s238_s3 = inlined_call_operand.vmem [shape: bf16[24,128], index: 3, kind: output, shape index: {}]  }
   0x1   :  { %9 = vsyncpa [#allocation5], 0  ;;  %s175_s12 = smov [#allocation2]   ;;  %s127_s16 = scalar_lea.hbm %s236_s1, 192 }
   0x2   :  { %s17_s13 = sshll.u32 %s175_s12, 4  ;;  %p128_p0 = scmp.ne.s32.totalorder %s236_s1, %s127_s16  ;;  %s18_s13 = int_to_ptr.vmem [resolvable:$true] %s17_s13 }
   0x3   :  { %p131_p1 = scmp.lt.u32.totalorder %s127_s16, %s236_s1 }
   0x5   :  { %p133_p2 = pnand %p131_p1, %p128_p0 }
   0x7   :  { %136 = shalt.err (!%p133_p2)
}
   0x8   :  { %s137_s21 = scalar_lea.vmem %s18_s13, 192  ;;  %p142_p4 = scmp.lt.s32.totalorder %s18_s13, %s18_s13 }
   0x9   :  { %p138_p3 = scmp.ne.s32.totalorder %s18_s13, %s137_s21  ;;  %p143_p5 = scmp.lt.s32.totalorder %s137_s21, %s137_s21 }
   0xb   :  { %p144_p6 = por %p143_p5, %p142_p4 }
   0xd   :  { %p145_p7 = pnand %p144_p6, %p138_p3 }
   0xf   :  { %148 = shalt.err (!%p145_p7)
}
  0x10   :  { %s176_s22 = smov 64   ;;  %s177_s23 = smov 4  }
  0x11   :  { %23 = dma.hbm_to_vmem [thread:$0]  %s236_s1, 192, %s18_s13, [#allocation3], %s176_s22, %s176_s22, %s177_s23  }
  0x12   :  { %s178_s26 = smov [#allocation4]   ;;  %s149_s30 = scalar_lea.hbm %s237_s2, 192 }
  0x13   :  { %s29_s27 = sshll.u32 %s178_s26, 4  ;;  %p150_p8 = scmp.ne.s32.totalorder %s237_s2, %s149_s30  ;;  %s30_s27 = int_to_ptr.vmem [resolvable:$true] %s29_s27 }
  0x14   :  { %p153_p9 = scmp.lt.u32.totalorder %s149_s30, %s237_s2 }
  0x16   :  { %p155_p10 = pnand %p153_p9, %p150_p8 }
  0x18   :  { %158 = shalt.err (!%p155_p10)
}
  0x19   :  { %s159_s8 = scalar_lea.vmem %s30_s27, 192  ;;  %p164_p12 = scmp.lt.s32.totalorder %s30_s27, %s30_s27 }
  0x1a   :  { %p160_p11 = scmp.ne.s32.totalorder %s30_s27, %s159_s8  ;;  %p165_p13 = scmp.lt.s32.totalorder %s159_s8, %s159_s8 }
  0x1c   :  { %p166_p0 = por %p165_p13, %p164_p12 }
  0x1e   :  { %p167_p1 = pnand %p166_p0, %p160_p11 }
  0x20   :  { %170 = shalt.err (!%p167_p1)
}
  0x21   :  { %35 = dma.hbm_to_vmem [thread:$0]  %s237_s2, 192, %s30_s27, [#allocation5], %s176_s22, %s176_s22, %s177_s23  }
  0x22   :  { %171 = dma.done.wait [#allocation3], 192  }
  0x23   :  { %172 = vsyncadd [#allocation3], 4294967104 }
  0x24   :  { %173 = dma.done.wait [#allocation5], 192  }
  0x25   :  { %174 = vsyncadd [#allocation5], 4294967104  ;;  %v105_v0 = vld [vmem:[#allocation2] sm:$0xff]   ;;  %v50_v3 = vld [vmem:[#allocation2 + $0x8] sm:$0xf] }
  0x26   :  { %v106_v1 = vunpack.c.l.bf16 %v105_v0  ;;  %v107_v2 = vunpack.c.h.bf16 %v105_v0  ;;  %v53_v4 = vunpack.c.l.bf16 %v50_v3  ;;  %v109_v8 = vld [vmem:[#allocation4] sm:$0xff]   ;;  %v101_v9 = vld [vmem:[%s235_s0] sm:$0xff]   ;;  %v56_v10 = vld [vmem:[#allocation4 + $0x8] sm:$0xf] }
  0x27   :  { %v110_v11 = vunpack.c.l.bf16 %v109_v8  ;;  %v111_v12 = vunpack.c.h.bf16 %v109_v8  ;;  %v44_v13 = vld [vmem:[%s235_s0 + $0x8] sm:$0xf]  ;;  %v102_v14 = vunpack.c.l.bf16 %v101_v9  ;;  %v59_v15 = vunpack.c.l.bf16 %v56_v10 }
  0x28   :  { %v60_v5 = vmul.f32 1.442695, %v106_v1  ;;  %v62_v6 = vmul.f32 1.442695, %v107_v2  ;;  %v64_v7 = vmul.f32 1.442695, %v53_v4  ;;  %v103_v17 = vunpack.c.h.bf16 %v101_v9 }
  0x29   :  { %v47_v20 = vunpack.c.l.bf16 %v44_v13 }
  0x2a   :  { %121 = vpow2.f32 %v60_v5 }
  0x2b   :  { %123 = vpow2.f32 %v62_v6 }
  0x2c   :  { %125 = vpow2.f32 %v64_v7 }
  0x34   :  { %v122_v16 = vpop.eup %121 }
  0x35   :  { %v124_v18 = vpop.eup %123  ;;  %v66_v19 = vmul.f32 %v122_v16, %v110_v11 }
  0x36   :  { %v126_v21 = vpop.eup %125  ;;  %v67_v22 = vmul.f32 %v124_v18, %v111_v12 }
  0x37   :  { %v69_v23 = vadd.f32 %v102_v14, %v66_v19  ;;  %v68_v24 = vmul.f32 %v126_v21, %v59_v15 }
  0x38   :  { %v70_v25 = vadd.f32 %v103_v17, %v67_v22 }
  0x39   :  { %v71_v26 = vadd.f32 %v68_v24, %v47_v20 }
  0x3a   :  { %v115_v27 = vpack.c.bf16 %v70_v25, %v69_v23 }
  0x3b   :  { %v99_v28 = vpack.c.bf16 %v71_v26, %v71_v26 }
  0x3c   :  { %116 = vst [vmem:[%s238_s3] sm:$0xff] %v115_v27  }
  0x3d   :  { %87 = vst [vmem:[%s238_s3 + $0x8] sm:$0xf] %v99_v28 }
  0x3e   :  { %92 = vsyncpa [#allocation3], 1 }
  0x3f   :  { %93 = vsyncpa [#allocation5], 1 }

</bundles_post_ra>
